<compile_context>
chip_gen: v5e
topology: v5e:2x2
jax: 0.10.0
libtpu: 0.0.40
codegen_flags: <defaults>
</compile_context>

<pallas_src>
import functools

import jax
import jax.numpy as jnp
from jax.experimental import pallas as pl
from jax.experimental.pallas import tpu as pltpu

_VMEM_LIMIT = 48 * 1024 * 1024   # safe on v5e/v6e (128 MiB phys) and v7x (64 MiB phys)


def _pick_tile(total, target):
    """Largest tile <= target that divides `total` and is a multiple of 8, else `total`."""
    if total <= target:
        return total
    t = (target // 8) * 8
    while t >= 8:
        if total % t == 0:
            return t
        t -= 8
    return total


# --------------------------------------------------------------------------
# Kernels
# --------------------------------------------------------------------------
def _qkv_proj_kernel(x_ref, w_ref, q_ref, k_ref, v_ref, *, dim, matmul_dtype):
    # x: (TM, C), w: (C, 3C) fused [Wq_perm | Wk_perm | Wv]
    x = x_ref[...].astype(matmul_dtype)
    w = w_ref[...].astype(matmul_dtype)
    y = jnp.dot(x, w, preferred_element_type=jnp.float32)        # (TM, 3C) single MXU dot
    q_ref[...] = y[:, :dim].astype(q_ref.dtype)
    k_ref[...] = y[:, dim:2 * dim].astype(k_ref.dtype)
    v_ref[...] = y[:, 2 * dim:].astype(v_ref.dtype)


def _flash_rope_attn_kernel(q_ref, k_ref, v_ref, tq_ref, tk_ref, o_ref,
                            qr_sc, m_sc, l_sc, acc_sc, *,
                            num_heads, head_dim, scale, matmul_dtype):
    # q/k: (1, T, C) with per-head layout [even | odd]; v: (1, TK, C) interleaved.
    # tq/tk: (T, D) packed [cos | sin] rotary tables for the q / k positions.
    H, D = num_heads, head_dim
    D2 = D // 2
    ki = pl.program_id(2)

    @pl.when(ki == 0)
    def _init():
        m_sc[...] = jnp.full_like(m_sc, -jnp.inf)
        l_sc[...] = jnp.zeros_like(l_sc)
        acc_sc[...] = jnp.zeros_like(acc_sc)
        # Rotate q once per (batch, q-tile); reused across every kv step.
        q = q_ref[0]                                    # (TQ, C)
        cq, sq = tq_ref[:, :D2], tq_ref[:, D2:]          # (TQ, D2)
        rot = []
        for h in range(H):
            e = q[:, h * D:h * D + D2]
            o = q[:, h * D + D2:(h + 1) * D]
            rot.append(jnp.concatenate([e * cq - o * sq, o * cq + e * sq], axis=-1))
        # Fold the 1/sqrt(D) scale into q so scores need no extra (TQ,TK) multiply.
        qr_sc[...] = jnp.concatenate(rot, axis=-1) * scale

    k = k_ref[0]                                        # (TK, C)
    v = v_ref[0]                                        # (TK, C) interleaved order
    ck, sk = tk_ref[:, :D2], tk_ref[:, D2:]              # (TK, D2)

    dims = (((1,), (1,)), ((), ()))                      # contract full head dim, no .T

    for h in range(H):
        k_e = k[:, h * D:h * D + D2]
        k_o = k[:, h * D + D2:(h + 1) * D]
        kr = jnp.concatenate([k_e * ck - k_o * sk, k_o * ck + k_e * sk], axis=-1)  # (TK, D)
        qr = qr_sc[:, h * D:(h + 1) * D]                                           # (TQ, D)

        s = jax.lax.dot_general(qr.astype(matmul_dtype), kr.astype(matmul_dtype),
                                dims, preferred_element_type=jnp.float32)          # (TQ, TK)

        # online softmax (flash) accumulation
        m_prev = m_sc[h]                                                           # (TQ, 1)
        m_new = jnp.maximum(m_prev, jnp.max(s, axis=-1, keepdims=True))
        alpha = jnp.exp(m_prev - m_new)
        p = jnp.exp(s - m_new)
        l_sc[h] = alpha * l_sc[h] + jnp.sum(p, axis=-1, keepdims=True)
        m_sc[h] = m_new

        v_h = v[:, h * D:(h + 1) * D]                    # original interleaved feature order
        acc_sc[:, h * D:(h + 1) * D] = (
            alpha * acc_sc[:, h * D:(h + 1) * D]
            + jnp.dot(p.astype(matmul_dtype), v_h.astype(matmul_dtype),
                      preferred_element_type=jnp.float32))
        # TODO(synk): dropout is p=0.0 (identity) and only the mask=None path is
        # implemented; an additive mask would be one extra input added to `s` here.

    @pl.when(ki == pl.num_programs(2) - 1)
    def _finalize():
        outs = []
        for h in range(H):
            inv = pl.reciprocal(l_sc[h], approx=True)    # EUP slot, near-free
            outs.append(acc_sc[:, h * D:(h + 1) * D] * inv)
        # one lane-dense (1, TQ, C) store
        o_ref[0] = jnp.concatenate(outs, axis=-1).astype(o_ref.dtype)


# --------------------------------------------------------------------------
# Wrapper
# --------------------------------------------------------------------------
def roformer_attention(x, wq, wk, wv, num_heads, *,
                       matmul_dtype=jnp.float32,     # set jnp.bfloat16 on v6e/v7x for ~2x MXU
                       tm=512, tq=256, tk=512):
    B, N, C = x.shape
    assert C % num_heads == 0
    H = num_heads
    D = C // H
    assert D % 2 == 0
    D2 = D // 2
    scale = D ** (-0.5)

    # ---- weight prep (one-time, outside the kernels) ----------------------
    # nn.Linear: y = x @ W.T.  Permute q/k OUTPUT columns so each head's D
    # features are [even | odd]; fuse everything into a single (C, 3C) matrix.
    deint = jnp.concatenate([jnp.arange(0, D, 2), jnp.arange(1, D, 2)])
    perm = (jnp.arange(H)[:, None] * D + deint[None, :]).reshape(-1)
    w_fused = jnp.concatenate([wq.T[:, perm], wk.T[:, perm], wv.T], axis=1)   # (C, 3C)

    # ---- Q/K/V projection (tiled, fused-weight Pallas matmul) -------------
    M = B * N
    TM = _pick_tile(M, tm)
    x2d = x.reshape(M, C)
    q2d, k2d, v2d = pl.pallas_call(
        functools.partial(_qkv_proj_kernel, dim=C, matmul_dtype=matmul_dtype),
        out_shape=tuple(jax.ShapeDtypeStruct((M, C), jnp.float32) for _ in range(3)),
        grid=(M // TM,),
        in_specs=[pl.BlockSpec((TM, C), lambda i: (i, 0)),
                  pl.BlockSpec((C, 3 * C), lambda i: (0, 0))],     # weights VMEM-resident
        out_specs=tuple(pl.BlockSpec((TM, C), lambda i: (i, 0)) for _ in range(3)),
        compiler_params=pltpu.CompilerParams(
            dimension_semantics=("parallel",),
            vmem_limit_bytes=_VMEM_LIMIT),
    )(x2d, w_fused)

    # free reshapes only -- no (B,H,N,D) transposes
    q = q2d.reshape(B, N, C)
    k = k2d.reshape(B, N, C)
    v = v2d.reshape(B, N, C)

    # ---- packed rotary table [cos | sin] (N, D) ----------------------------
    pos = jnp.arange(N, dtype=jnp.float32)
    inv = jnp.power(10000.0, -2.0 * jnp.arange(D2, dtype=jnp.float32) / D)
    ang = pos[:, None] * inv[None, :]                                # (N, D2)
    cos_sin = jnp.concatenate([jnp.cos(ang), jnp.sin(ang)], axis=-1)  # (N, D)

    # ---- flash-style rotary attention --------------------------------------
    TQ = _pick_tile(N, tq)
    TK = _pick_tile(N, tk)
    nq, nk = N // TQ, N // TK

    out = pl.pallas_call(
        functools.partial(_flash_rope_attn_kernel, num_heads=H, head_dim=D,
                          scale=scale, matmul_dtype=matmul_dtype),
        out_shape=jax.ShapeDtypeStruct((B, N, C), jnp.float32),
        grid=(B, nq, nk),
        in_specs=[
            pl.BlockSpec((1, TQ, C), lambda b, qi, ki: (b, qi, 0)),   # q
            pl.BlockSpec((1, TK, C), lambda b, qi, ki: (b, ki, 0)),   # k
            pl.BlockSpec((1, TK, C), lambda b, qi, ki: (b, ki, 0)),   # v
            pl.BlockSpec((TQ, D), lambda b, qi, ki: (qi, 0)),         # cos|sin for q rows
            pl.BlockSpec((TK, D), lambda b, qi, ki: (ki, 0)),         # cos|sin for k rows
        ],
        out_specs=pl.BlockSpec((1, TQ, C), lambda b, qi, ki: (b, qi, 0)),
        scratch_shapes=[
            pltpu.VMEM((TQ, C), jnp.float32),       # rotated (and pre-scaled) q
            pltpu.VMEM((H, TQ, 1), jnp.float32),    # running max per head
            pltpu.VMEM((H, TQ, 1), jnp.float32),    # running denom per head
            pltpu.VMEM((TQ, C), jnp.float32),       # output accumulator (lane-dense)
        ],
        compiler_params=pltpu.CompilerParams(
            dimension_semantics=("parallel", "parallel", "arbitrary"),
            vmem_limit_bytes=_VMEM_LIMIT),
    )(q, k, v, cos_sin, cos_sin)

    return out    # already (B, N, C)


# --------------------------------------------------------------------------
# Pure-JAX reference (mirrors the PyTorch module, interleaved RoPE)
# --------------------------------------------------------------------------
def roformer_reference(x, wq, wk, wv, num_heads):
    B, N, C = x.shape
    D = C // num_heads
    q = (x @ wq.T).reshape(B, N, num_heads, D).transpose(0, 2, 1, 3)
    k = (x @ wk.T).reshape(B, N, num_heads, D).transpose(0, 2, 1, 3)
    v = (x @ wv.T).reshape(B, N, num_heads, D).transpose(0, 2, 1, 3)

    pos = jnp.arange(N, dtype=jnp.float32)
    inv = jnp.power(10000.0, -2.0 * jnp.arange(D // 2, dtype=jnp.float32) / D)
    ang = pos[:, None] * inv[None, :]
    cos_pos = jnp.repeat(jnp.cos(ang), 2, axis=-1)[None, None]   # (1,1,N,D)
    sin_pos = jnp.repeat(jnp.sin(ang), 2, axis=-1)[None, None]

    def embed(t):
        t2 = jnp.stack([-t[..., 1::2], t[..., 0::2]], axis=-1).reshape(t.shape)
        return t * cos_pos + t2 * sin_pos

    q = embed(q)
    k = embed(k)
    attn = jnp.einsum('bhnd,bhmd->bhnm', q, k) * (D ** -0.5)
    attn = jax.nn.softmax(attn, axis=-1)
    out = jnp.einsum('bhnm,bhmd->bhnd', attn, v)
    return out.transpose(0, 2, 1, 3).reshape(B, N, C)


# --------------------------------------------------------------------------
if __name__ == "__main__":
    B, N, C = 2, 8, 32
    num_heads = 4

    key = jax.random.PRNGKey(0)
    kx, kq, kk, kv = jax.random.split(key, 4)
    x = jax.random.normal(kx, (B, N, C), dtype=jnp.float32)
    w_scale = 1.0 / (C ** 0.5)
    wq = jax.random.normal(kq, (C, C), dtype=jnp.float32) * w_scale
    wk = jax.random.normal(kk, (C, C), dtype=jnp.float32) * w_scale
    wv = jax.random.normal(kv, (C, C), dtype=jnp.float32) * w_scale

    out = roformer_attention(x, wq, wk, wv, num_heads)
    out = jax.block_until_ready(out)

    ref = roformer_reference(x, wq, wk, wv, num_heads)
    assert out.shape == (B, N, C)
    # tolerance widened slightly vs 1e-4: approx-reciprocal softmax normalization (EUP)
    err = jnp.max(jnp.abs(out - ref))
    assert jnp.allclose(out, ref, atol=2e-3, rtol=2e-3), f"max abs err {err}"

    print("KERNEL_OK")
</pallas_src>

<mosaic_0001>
module attributes {stable_mosaic.version = 11 : i64} {
  func.func @_qkv_proj_kernel(%arg0: i32, %arg1: memref<16x32xf32, #tpu.memory_space<vmem>>, %arg2: memref<32x96xf32, #tpu.memory_space<vmem>>, %arg3: memref<16x32xf32, #tpu.memory_space<vmem>>, %arg4: memref<16x32xf32, #tpu.memory_space<vmem>>, %arg5: memref<16x32xf32, #tpu.memory_space<vmem>>) attributes {dimension_semantics = [#tpu.dimension_semantics<parallel>], iteration_bounds = array<i64: 1>, scalar_prefetch = 0 : i64, scratch_operands = 0 : i64, tpu.core_type = #tpu.core_type<tc>, window_params = [{transform_indices = @transform_0, window_bounds = array<i64: 16, 32>}, {pipeline_mode = #tpu.pipeline_mode<synchronous>, transform_indices = @transform_1, window_bounds = array<i64: 32, 96>}, {transform_indices = @transform_2, window_bounds = array<i64: 16, 32>}, {transform_indices = @transform_3, window_bounds = array<i64: 16, 32>}, {transform_indices = @transform_4, window_bounds = array<i64: 16, 32>}]} {
    %c0 = arith.constant 0 : index
    %c0_0 = arith.constant 0 : index
    %0 = vector.load %arg1[%c0, %c0_0] : memref<16x32xf32, #tpu.memory_space<vmem>>, vector<16x32xf32>
    %c0_1 = arith.constant 0 : index
    %c0_2 = arith.constant 0 : index
    %1 = vector.load %arg2[%c0_1, %c0_2] : memref<32x96xf32, #tpu.memory_space<vmem>>, vector<32x96xf32>
    %cst = arith.constant dense<0.000000e+00> : vector<16x96xf32>
    %2 = tpu.matmul %0, %1, %cst {dimension_numbers = #tpu.dot_dimension_numbers<[1], [0], [0], [1], [0, 0, 1, 1], [], []>} : vector<16x32xf32>, vector<32x96xf32>, vector<16x96xf32> -> vector<16x96xf32>
    %3 = vector.extract_strided_slice %2 {offsets = [0, 0], sizes = [16, 32], strides = [1, 1]} : vector<16x96xf32> to vector<16x32xf32>
    %c0_3 = arith.constant 0 : index
    %c0_4 = arith.constant 0 : index
    %4 = vector.load %arg3[%c0_3, %c0_4] : memref<16x32xf32, #tpu.memory_space<vmem>>, vector<16x32xf32>
    tpu.vector_store %arg3[%c0_3, %c0_4], %3 {strides = array<i32>} : memref<16x32xf32, #tpu.memory_space<vmem>>, vector<16x32xf32>,
    %5 = vector.extract_strided_slice %2 {offsets = [0, 32], sizes = [16, 32], strides = [1, 1]} : vector<16x96xf32> to vector<16x32xf32>
    %c0_5 = arith.constant 0 : index
    %c0_6 = arith.constant 0 : index
    %6 = vector.load %arg4[%c0_5, %c0_6] : memref<16x32xf32, #tpu.memory_space<vmem>>, vector<16x32xf32>
    tpu.vector_store %arg4[%c0_5, %c0_6], %5 {strides = array<i32>} : memref<16x32xf32, #tpu.memory_space<vmem>>, vector<16x32xf32>,
    %7 = vector.extract_strided_slice %2 {offsets = [0, 64], sizes = [16, 32], strides = [1, 1]} : vector<16x96xf32> to vector<16x32xf32>
    %c0_7 = arith.constant 0 : index
    %c0_8 = arith.constant 0 : index
    %8 = vector.load %arg5[%c0_7, %c0_8] : memref<16x32xf32, #tpu.memory_space<vmem>>, vector<16x32xf32>
    tpu.vector_store %arg5[%c0_7, %c0_8], %7 {strides = array<i32>} : memref<16x32xf32, #tpu.memory_space<vmem>>, vector<16x32xf32>,
    return
  }
  func.func @transform_0(%arg0: i32) -> (i32, i32) {
    %c0_i32 = arith.constant 0 : i32
    %c0_i32_0 = arith.constant 0 : i32
    return %arg0, %c0_i32 : i32, i32
  }
  func.func @transform_1(%arg0: i32) -> (i32, i32) {
    %c0_i32 = arith.constant 0 : i32
    %c0_i32_0 = arith.constant 0 : i32
    %c0_i32_1 = arith.constant 0 : i32
    return %c0_i32, %c0_i32_0 : i32, i32
  }
  func.func @transform_2(%arg0: i32) -> (i32, i32) {
    %c0_i32 = arith.constant 0 : i32
    %c0_i32_0 = arith.constant 0 : i32
    return %arg0, %c0_i32 : i32, i32
  }
  func.func @transform_3(%arg0: i32) -> (i32, i32) {
    %c0_i32 = arith.constant 0 : i32
    %c0_i32_0 = arith.constant 0 : i32
    return %arg0, %c0_i32 : i32, i32
  }
  func.func @transform_4(%arg0: i32) -> (i32, i32) {
    %c0_i32 = arith.constant 0 : i32
    %c0_i32_0 = arith.constant 0 : i32
    return %arg0, %c0_i32 : i32, i32
  }
}

</mosaic_0001>

<bundles_post_ra>
// kernel: tpu_custom_call.1
= control target key start
LH: loop header
LB: loop body
LE: loop exit
PB: predicated region body
PF: predicated region fallthrough
CT: control target
= control target key end

     0   :  { %10 = vsyncpa [#allocation3], 0  ;;  %s374_s0 = inlined_call_operand.hbm [shape: f32[16,32], index: 0, kind: input, shape index: {}]   ;;  %s375_s1 = inlined_call_operand.hbm [shape: f32[32,96], index: 1, kind: input, shape index: {}]   ;;  %s376_s2 = inlined_call_operand.hbm [shape: f32[16,32], index: 2, kind: output, shape index: {0}]   ;;  %s377_s3 = inlined_call_operand.hbm [shape: f32[16,32], index: 3, kind: output, shape index: {1}]   ;;  %s378_s4 = inlined_call_operand.hbm [shape: f32[16,32], index: 4, kind: output, shape index: {2}]  }
   0x1   :  { %11 = vsyncpa [#allocation6], 0 }
   0x2   :  { %12 = vsyncpa [#allocation4], 0 }
   0x3   :  { %13 = vsyncpa [#allocation9], 0  ;;  %s18_s17 = sshll.u32 %s374_s0, 4  ;;  %s302_s18 = smov [#allocation2]   ;;  %s19_s17 = int_to_ptr.hbm [resolvable:$true] %s18_s17 }
   0x4   :  { %s20_s19 = sshll.u32 %s302_s18, 4  ;;  %s31_s22 = sshll.u32 %s375_s1, 4  ;;  %s21_s19 = int_to_ptr.vmem [resolvable:$true] %s20_s19  ;;  %s32_s22 = int_to_ptr.hbm [resolvable:$true] %s31_s22 }
   0x5   :  { %s303_s23 = smov 128   ;;  %s304_s24 = smov 8  }
   0x6   :  { %26 = dma.hbm_to_vmem [thread:$0]  %s19_s17, 256, %s21_s19, [#allocation3], %s303_s23, %s303_s23, %s304_s24  }
   0x7   :  { %s305_s25 = smov [#allocation5]  }
   0x8   :  { %s33_s26 = sshll.u32 %s305_s25, 4  ;;  %s34_s26 = int_to_ptr.vmem [resolvable:$true] %s33_s26 }
   0x9   :  { %39 = dma.hbm_to_vmem [thread:$0]  %s32_s22, 512, %s34_s26, [#allocation6], %s303_s23, %s303_s23, %s304_s24  }
   0xa   :  { %294 = dma.done.wait [#allocation3], 256  }
   0xb   :  { %295 = vsyncadd [#allocation3], 4294967040 }
   0xc   :  { %296 = dma.done.wait [#allocation6], 512  }
   0xd   :  { %297 = vsyncadd [#allocation6], 4294966784  ;;  %v53_v0 = vld [vmem:[#allocation5 + $0x18] sm:$0xff]  ;;  %v52_v1 = vld [vmem:[#allocation5 + $0x10] sm:$0xff]  ;;  %vm54_vm0 = vcmask 261120   ;;  %s110_s27 = sshll.u32 %s376_s2, 4  ;;  %s111_s27 = int_to_ptr.hbm [resolvable:$true] %s110_s27 }
   0xe   :  { %73 = vmatpush.msra.mxu0 %v53_v0  ;;  %161 = vmatpush.msra.mxu1 %v53_v0  ;;  %v51_v2 = vld [vmem:[#allocation5 + $0x8] sm:$0xff]  ;;  %v50_v3 = vld [vmem:[#allocation5] sm:$0xff]  ;;  %v48_v4 = vld [vmem:[#allocation2] sm:$0xff]  ;;  %s306_s28 = smov [#allocation7]   ;;  %s307_s30 = smov 64  }
   0xf   :  { %v49_v5 = vld [vmem:[#allocation2 + $0x8] sm:$0xff]  ;;  %s108_s29 = sshll.u32 %s306_s28, 4  ;;  %s308_s5 = smov 96   ;;  %s109_s29 = int_to_ptr.vmem [resolvable:$true] %s108_s29 }
  0x10   :  { %74 = vmatpush.msra.mxu0 %v52_v1  ;;  %162 = vmatpush.msra.mxu1 %v52_v1  ;;  %s309_s2 = smov [#allocation8]   ;;  %s123_s9 = sshll.u32 %s377_s3, 4  ;;  %s124_s9 = int_to_ptr.hbm [resolvable:$true] %s123_s9 }
  0x11   :  { %s121_s6 = sshll.u32 %s309_s2, 4  ;;  %s310_s10 = smov [#allocation10]   ;;  %s122_s6 = int_to_ptr.vmem [resolvable:$true] %s121_s6 }
  0x12   :  { %75 = vmatpush.msra.mxu0 %v51_v2  ;;  %163 = vmatpush.msra.mxu1 %v51_v2  ;;  %s134_s11 = sshll.u32 %s310_s10, 4  ;;  %s136_s14 = sshll.u32 %s378_s4, 4  ;;  %s135_s11 = int_to_ptr.vmem [resolvable:$true] %s134_s11  ;;  %s137_s14 = int_to_ptr.hbm [resolvable:$true] %s136_s14 }
  0x14   :  { %76 = vmatpush.msra.mxu0 %v50_v3  ;;  %164 = vmatpush.msra.mxu1 %v50_v3 }
  0x15   :  { %159 = vmatmul.msk.f32.vlgmr.msra.gmra.mxu0 %vm54_vm0, %v48_v4  ;;  %160 = vmatmul.msk.f32.vlgmr.msra.gmra.mxu1 %vm54_vm0, %v49_v5 }
  0x92   :  { %v78_v6 = vpop.f32.mrf.mxu0  ;;  %v81_v7 = vpop.f32.mrf.mxu1 }
  0x93   :  { %84 = vst.msk [vmem:[#allocation7] sm:$0xff] %vm54_vm0, %v78_v6  ;;  %96 = vrot.lane.b32.xlu1 %v78_v6, %s307_s30  ;;  %88 = vrot.lane.b32.xlu0 %v78_v6, %s308_s5 }
  0x94   :  { %85 = vst.msk [vmem:[#allocation7 + $0x8] sm:$0xff] %vm54_vm0, %v81_v7 }
  0x95   :  { %116 = dma.vmem_to_hbm [thread:$0]  %s109_s29, 256, %s111_s27, [#allocation4], %s303_s23, %s303_s23, %s304_s24  }
  0x9b   :  { %98 = vrot.lane.b32.xlu1 %v81_v7, %s307_s30  ;;  %90 = vrot.lane.b32.xlu0 %v81_v7, %s308_s5 }
 0x105   :  { %v97_v8 = vpop.permute.xlu1 %96  ;;  %v89_v9 = vpop.permute.xlu0 %88 }
 0x106   :  { %102 = vst.msk [vmem:[#allocation10] sm:$0xff] %vm54_vm0, %v97_v8 }
 0x107   :  { %94 = vst.msk [vmem:[#allocation8] sm:$0xff] %vm54_vm0, %v89_v9 }
 0x10d   :  { %v99_v10 = vpop.permute.xlu1 %98  ;;  %v91_v11 = vpop.permute.xlu0 %90 }
 0x10e   :  { %103 = vst.msk [vmem:[#allocation10 + $0x8] sm:$0xff] %vm54_vm0, %v99_v10 }
 0x10f   :  { %95 = vst.msk [vmem:[#allocation8 + $0x8] sm:$0xff] %vm54_vm0, %v91_v11 }
 0x110   :  { %129 = dma.vmem_to_hbm [thread:$0]  %s122_s6, 256, %s124_s9, [#allocation9], %s303_s23, %s303_s23, %s304_s24  }
 0x111   :  { %142 = dma.vmem_to_hbm [thread:$0]  %s135_s11, 256, %s137_s14, [#allocation9], %s303_s23, %s303_s23, %s304_s24  }
 0x112   :  { %298 = dma.done.wait [#allocation4], 256  }
 0x113   :  { %299 = vsyncadd [#allocation4], 4294967040 }
 0x114   :  { %300 = dma.done.wait [#allocation9], 512  }
 0x115   :  { %301 = vsyncadd [#allocation9], 4294966784 }
 0x116   :  { %155 = vsyncpa [#allocation3], 1 }
 0x117   :  { %156 = vsyncpa [#allocation6], 1 }
 0x118   :  { %157 = vsyncpa [#allocation4], 1 }
 0x119   :  { %158 = vsyncpa [#allocation9], 1 }

</bundles_post_ra>
